<compile_context>
chip_gen: v5e
topology: v5e:2x2
jax: 0.10.0
libtpu: 0.0.40
codegen_flags: <defaults>
</compile_context>

<pallas_src>
import jax
import jax.numpy as jnp
from jax.experimental import pallas as pl
from jax.experimental.pallas import tpu as pltpu

LANE = 128     # TPU lane width (last dim)
SUBLANE_BF16 = 16  # bf16 packs 16 rows per vreg


def _round_up(x, m):
    return (x + m - 1) // m * m


def _vmem_capacity_bytes():
    """Physical per-core VMEM; conservative fallback if the query is unavailable."""
    try:
        cap = int(pltpu.get_tpu_info().vmem_capacity_bytes)
        if cap > 0:
            return cap
    except Exception:
        pass
    return 64 << 20   # v7x per-TensorCore size: safe lower bound for all gens


def decoder_fc_kernel(x_ref, w_ref, b_ref, o_ref, acc_ref):
    """One (batch-tile, K-tile) grid step of logits = x @ W + b, softmax over C.

    x_ref:   (TM, TK)     input dtype (cast to bf16 in-kernel, right before the dot)
    w_ref:   (TK, C_pad)  bf16  (prepared once; padded rows/cols are zero)
    b_ref:   (1, C_pad)   f32   (padded lanes hold a huge negative value)
    o_ref:   (TM, C_pad)  output tile (written only on the last K step)
    acc_ref: (TM, C_pad)  f32 accumulator scratch
    """
    k = pl.program_id(1)

    @pl.when(k == 0)
    def _():
        acc_ref[...] = jnp.zeros_like(acc_ref)

    # In-kernel bf16 cast: x streams from HBM exactly once, in its native dtype.
    x_bf = x_ref[...].astype(jnp.bfloat16)
    acc_ref[...] += jnp.dot(x_bf, w_ref[...], preferred_element_type=jnp.float32)

    @pl.when(k == pl.num_programs(1) - 1)
    def _():
        logits = acc_ref[...] + b_ref[...]           # padded lanes -> ~-1e30
        m = jnp.max(logits, axis=-1, keepdims=True)
        e = jnp.exp(logits - m)                      # padded lanes underflow to 0
        denom = jnp.sum(e, axis=-1, keepdims=True)
        # Exact divide: kernel is HBM-bound so this is hidden; the approx
        # reciprocal violated the row-sum==1 tolerance.
        o_ref[...] = (e / denom).astype(o_ref.dtype)


def prepare_decoder_fc_params(weight, bias, compute_dtype=jnp.bfloat16, tk=None):
    """One-time parameter preparation (hoisted off the per-call path).

    weight: (C, F) in PyTorch nn.Linear layout -> (F_pad, C_pad) compute_dtype
    bias:   (C,) -> (1, C_pad) f32; padded lanes get a huge negative value so
            padded logits contribute nothing to the softmax.
    Returns (w_prepared, b_prepared, c_out, tk); tk == F_pad means the weight
    stays fully VMEM-resident, otherwise it is streamed along a K grid axis.
    """
    C, F = weight.shape
    C_pad = _round_up(C, LANE)
    itw = jnp.dtype(compute_dtype).itemsize

    if tk is None:
        # Generation-aware residency threshold (accounts for Pallas's default
        # double-buffering of the constant-index weight block).
        budget = _vmem_capacity_bytes() // 6
        w_bytes = _round_up(F, LANE) * C_pad * itw
        if w_bytes <= budget:
            tk = _round_up(F, LANE)
        else:
            nk = pl.cdiv(w_bytes, budget)
            tk = _round_up(pl.cdiv(F, nk), LANE)
    F_pad = _round_up(F, tk)

    w_t = jnp.zeros((F_pad, C_pad), dtype=compute_dtype)
    w_t = w_t.at[:F, :C].set(weight.T.astype(compute_dtype))

    NEG = jnp.float32(-1e30)   # finite "-inf": exp underflows to exactly 0
    b2 = jnp.full((1, C_pad), NEG, dtype=jnp.float32)
    b2 = b2.at[:, :C].set(bias.astype(jnp.float32))
    return w_t, b2, C, tk


def decoder_fc_forward(x, w_prepared, b_prepared, c_out, tk, *, tm=1024):
    """DecoderFC.forward: flatten(>2D) -> Linear -> softmax over classes."""
    if x.ndim > 2:
        x = x.reshape(x.shape[0], -1)                # torch.flatten(x, 1)
    out_dtype = x.dtype
    B, F = x.shape
    F_pad, C_pad = w_prepared.shape
    assert F <= F_pad and F_pad % tk == 0
    nk = F_pad // tk

    itx = jnp.dtype(x.dtype).itemsize
    itw = jnp.dtype(w_prepared.dtype).itemsize
    ito = jnp.dtype(out_dtype).itemsize

    vmem_cap = _vmem_capacity_bytes()
    vmem_budget = vmem_cap - (16 << 20)              # headroom for compiler scratch

    def footprint(tm_):
        return (2 * tm_ * tk * itx                   # double-buffered x tile
                + 2 * tk * C_pad * itw               # weight tile (double-buffered)
                + 2 * C_pad * 4                      # bias
                + 2 * tm_ * C_pad * ito              # double-buffered out tile
                + tm_ * C_pad * 4)                   # f32 accumulator scratch

    # Batch tile: large (fills MXU M, amortizes ~0.35us/step), multiple of 16
    # (bf16 M packing), split into >=2 tiles for megacore when B is large, and
    # shrunk if the double-buffered tiles would overflow the VMEM budget.
    TM = min(tm, _round_up(B, SUBLANE_BF16))
    if B >= 2 * SUBLANE_BF16 and pl.cdiv(B, TM) < 2:
        TM = _round_up(pl.cdiv(B, 2), SUBLANE_BF16)
    while TM > SUBLANE_BF16 and footprint(TM) > 0.6 * vmem_budget:
        TM = _round_up(TM // 2, SUBLANE_BF16)

    B_pad = _round_up(B, TM)
    nb = B_pad // TM

    # Pad only when actually required; x keeps its native dtype (the bf16 cast
    # happens inside the kernel, right before the dot).
    if (B_pad, F_pad) != (B, F):
        x = jnp.pad(x, ((0, B_pad - B), (0, F_pad - F)))

    vmem_limit = max(16 << 20,
                     min(int(footprint(TM) * 1.5) + (4 << 20), vmem_budget))

    out = pl.pallas_call(
        decoder_fc_kernel,
        out_shape=jax.ShapeDtypeStruct((B_pad, C_pad), out_dtype),
        grid=(nb, nk),
        in_specs=[
            pl.BlockSpec((TM, tk), lambda i, k: (i, k)),       # x batch/K tile
            pl.BlockSpec((tk, C_pad), lambda i, k: (k, 0)),    # weight K tile
            pl.BlockSpec((1, C_pad), lambda i, k: (0, 0)),     # bias, resident
        ],
        out_specs=pl.BlockSpec((TM, C_pad), lambda i, k: (i, 0)),
        scratch_shapes=[pltpu.VMEM((TM, C_pad), jnp.float32)],
        compiler_params=pltpu.CompilerParams(
            dimension_semantics=("parallel", "arbitrary"),
            vmem_limit_bytes=vmem_limit,
        ),
    )(x, w_prepared, b_prepared)

    # Avoid the extra slice pass when the padded result is already exact.
    if B_pad == B and C_pad == c_out:
        return out
    return out[:B, :c_out]


if __name__ == "__main__":
    key = jax.random.PRNGKey(0)
    kx, kw, kb = jax.random.split(key, 3)

    # Small shapes consistent with the module: x may be >2-D and gets flattened.
    B, Cin, H, W = 2, 4, 16, 16            # -> output_size1 = 4*16*16 = 1024
    c_out = 16
    output_size1 = Cin * H * W

    x = jax.random.normal(kx, (B, Cin, H, W), dtype=jnp.float32)

    # Deterministic nn.Linear-style init: U(-1/sqrt(fan_in), 1/sqrt(fan_in)).
    bound = 1.0 / (output_size1 ** 0.5)
    weight = jax.random.uniform(kw, (c_out, output_size1), jnp.float32, -bound, bound)
    bias = jax.random.uniform(kb, (c_out,), jnp.float32, -bound, bound)

    # One-time parameter prep (transpose / pad / cast hoisted off the hot path).
    w_prep, b_prep, _, tk = prepare_decoder_fc_params(weight, bias)

    out = decoder_fc_forward(x, w_prep, b_prep, c_out, tk)
    out = jax.block_until_ready(out)

    # --- References -------------------------------------------------------
    x_flat = x.reshape(B, -1)

    # Pure f32 reference (loose tolerance: kernel matmul runs in bf16).
    ref_f32 = jax.nn.softmax(x_flat @ weight.T + bias, axis=-1)

    # bf16-consistent reference (same input rounding as the kernel).
    xb = x_flat.astype(jnp.bfloat16).astype(jnp.float32)
    wb = weight.T.astype(jnp.bfloat16).astype(jnp.float32)
    ref_bf16 = jax.nn.softmax(xb @ wb + bias, axis=-1)

    assert out.shape == (B, c_out)
    assert bool(jnp.all(jnp.isfinite(out)))
    assert jnp.allclose(jnp.sum(out, axis=-1), 1.0, atol=1e-3), \
        "softmax rows must sum to 1"
    assert jnp.allclose(out, ref_bf16, atol=2e-3), "mismatch vs bf16 reference"
    assert jnp.allclose(out, ref_f32, atol=1e-2), "mismatch vs f32 reference"

    print("KERNEL_OK")
</pallas_src>

<mosaic_0001>
module attributes {stable_mosaic.version = 11 : i64} {
  func.func @decoder_fc_kernel(%arg0: i32, %arg1: i32, %arg2: memref<16x1024xf32, #tpu.memory_space<vmem>>, %arg3: memref<1024x128xbf16, #tpu.memory_space<vmem>>, %arg4: memref<1x128xf32, #tpu.memory_space<vmem>>, %arg5: memref<16x128xf32, #tpu.memory_space<vmem>>, %arg6: memref<16x128xf32, #tpu.memory_space<vmem>>) attributes {dimension_semantics = [#tpu.dimension_semantics<parallel>, #tpu.dimension_semantics<arbitrary>], iteration_bounds = array<i64: 1, 1>, scalar_prefetch = 0 : i64, scratch_operands = 1 : i64, tpu.core_type = #tpu.core_type<tc>, window_params = [{transform_indices = @transform_0, window_bounds = array<i64: 16, 1024>}, {transform_indices = @transform_1, window_bounds = array<i64: 1024, 128>}, {pipeline_mode = #tpu.pipeline_mode<synchronous>, transform_indices = @transform_2, window_bounds = array<i64: 1, 128>}, {transform_indices = @transform_3, window_bounds = array<i64: 16, 128>}]} {
    %c0_i32 = arith.constant 0 : i32
    %0 = arith.cmpi eq, %arg1, %c0_i32 : i32
    %1 = arith.extui %0 : i1 to i32
    %c0_i32_0 = arith.constant 0 : i32
    %2 = arith.cmpi ne, %1, %c0_i32_0 : i32
    scf.if %2 {
      %cst_10 = arith.constant 0.000000e+00 : f32
      %13 = vector.broadcast %cst_10 : f32 to vector<16x128xf32>
      %c0_11 = arith.constant 0 : index
      %c0_12 = arith.constant 0 : index
      %14 = vector.load %arg6[%c0_11, %c0_12] : memref<16x128xf32, #tpu.memory_space<vmem>>, vector<16x128xf32>
      tpu.vector_store %arg6[%c0_11, %c0_12], %13 {strides = array<i32>} : memref<16x128xf32, #tpu.memory_space<vmem>>, vector<16x128xf32>,
    } else {
    }
    %c0 = arith.constant 0 : index
    %c0_1 = arith.constant 0 : index
    %3 = vector.load %arg2[%c0, %c0_1] : memref<16x1024xf32, #tpu.memory_space<vmem>>, vector<16x1024xf32>
    %4 = arith.truncf %3 : vector<16x1024xf32> to vector<16x1024xbf16>
    %c0_2 = arith.constant 0 : index
    %c0_3 = arith.constant 0 : index
    %5 = vector.load %arg6[%c0_2, %c0_3] : memref<16x128xf32, #tpu.memory_space<vmem>>, vector<16x128xf32>
    %c0_4 = arith.constant 0 : index
    %c0_5 = arith.constant 0 : index
    %6 = vector.load %arg3[%c0_4, %c0_5] : memref<1024x128xbf16, #tpu.memory_space<vmem>>, vector<1024x128xbf16>
    %cst = arith.constant dense<0.000000e+00> : vector<16x128xf32>
    %7 = tpu.matmul %4, %6, %cst {dimension_numbers = #tpu.dot_dimension_numbers<[1], [0], [0], [1], [0, 0, 1, 1], [], []>} : vector<16x1024xbf16>, vector<1024x128xbf16>, vector<16x128xf32> -> vector<16x128xf32>
    %8 = arith.addf %5, %7 : vector<16x128xf32>
    %c0_6 = arith.constant 0 : index
    %c0_7 = arith.constant 0 : index
    %9 = vector.load %arg6[%c0_6, %c0_7] : memref<16x128xf32, #tpu.memory_space<vmem>>, vector<16x128xf32>
    tpu.vector_store %arg6[%c0_6, %c0_7], %8 {strides = array<i32>} : memref<16x128xf32, #tpu.memory_space<vmem>>, vector<16x128xf32>,
    %c0_i32_8 = arith.constant 0 : i32
    %10 = arith.cmpi eq, %arg1, %c0_i32_8 : i32
    %11 = arith.extui %10 : i1 to i32
    %c0_i32_9 = arith.constant 0 : i32
    %12 = arith.cmpi ne, %11, %c0_i32_9 : i32
    scf.if %12 {
      %c0_10 = arith.constant 0 : index
      %c0_11 = arith.constant 0 : index
      %13 = vector.load %arg6[%c0_10, %c0_11] : memref<16x128xf32, #tpu.memory_space<vmem>>, vector<16x128xf32>
      %c0_12 = arith.constant 0 : index
      %c0_13 = arith.constant 0 : index
      %14 = vector.load %arg4[%c0_12, %c0_13] : memref<1x128xf32, #tpu.memory_space<vmem>>, vector<1x128xf32>
      %15 = vector.broadcast %14 : vector<1x128xf32> to vector<16x128xf32>
      %16 = arith.addf %13, %15 : vector<16x128xf32>
      %cst_14 = arith.constant dense<0xFF800000> : vector<16xf32>
      %17 = vector.multi_reduction <maximumf>, %16, %cst_14 [1] : vector<16x128xf32> to vector<16xf32>
      %18 = vector.shape_cast %17 : vector<16xf32> to vector<16x1xf32>
      %19 = vector.broadcast %18 : vector<16x1xf32> to vector<16x128xf32>
      %20 = arith.subf %16, %19 : vector<16x128xf32>
      %21 = math.exp %20 : vector<16x128xf32>
      %cst_15 = arith.constant dense<0.000000e+00> : vector<16xf32>
      %22 = vector.multi_reduction <add>, %21, %cst_15 [1] : vector<16x128xf32> to vector<16xf32>
      %23 = vector.shape_cast %22 : vector<16xf32> to vector<16x1xf32>
      %24 = vector.broadcast %23 : vector<16x1xf32> to vector<16x128xf32>
      %25 = arith.divf %21, %24 : vector<16x128xf32>
      %c0_16 = arith.constant 0 : index
      %c0_17 = arith.constant 0 : index
      %26 = vector.load %arg5[%c0_16, %c0_17] : memref<16x128xf32, #tpu.memory_space<vmem>>, vector<16x128xf32>
      tpu.vector_store %arg5[%c0_16, %c0_17], %25 {strides = array<i32>} : memref<16x128xf32, #tpu.memory_space<vmem>>, vector<16x128xf32>,
    } else {
    }
    return
  }
  func.func @transform_0(%arg0: i32, %arg1: i32) -> (i32, i32) {
    %c0_i32 = arith.constant 0 : i32
    return %arg0, %arg1 : i32, i32
  }
  func.func @transform_1(%arg0: i32, %arg1: i32) -> (i32, i32) {
    %c0_i32 = arith.constant 0 : i32
    %c0_i32_0 = arith.constant 0 : i32
    return %arg1, %c0_i32 : i32, i32
  }
  func.func @transform_2(%arg0: i32, %arg1: i32) -> (i32, i32) {
    %c0_i32 = arith.constant 0 : i32
    %c0_i32_0 = arith.constant 0 : i32
    %c0_i32_1 = arith.constant 0 : i32
    return %c0_i32, %c0_i32_0 : i32, i32
  }
  func.func @transform_3(%arg0: i32, %arg1: i32) -> (i32, i32) {
    %c0_i32 = arith.constant 0 : i32
    %c0_i32_0 = arith.constant 0 : i32
    return %arg0, %c0_i32 : i32, i32
  }
}

</mosaic_0001>

<bundles_post_ra>
// kernel: tpu_custom_call.1
= control target key start
LH: loop header
LB: loop body
LE: loop exit
PB: predicated region body
PF: predicated region fallthrough
CT: control target
= control target key end

     0   :  { %8 = vsyncpa [#allocation4], 0  ;;  %s1239_s0 = inlined_call_operand.hbm [shape: f32[16,1024], index: 0, kind: input, shape index: {}]   ;;  %s1240_s1 = inlined_call_operand.hbm [shape: bf16[1024,128], index: 1, kind: input, shape index: {}]   ;;  %s1241_s2 = inlined_call_operand.vmem [shape: f32[1,128], index: 2, kind: input, shape index: {}]   ;;  %s1242_s3 = inlined_call_operand.hbm [shape: f32[16,128], index: 3, kind: output, shape index: {}]  }
   0x1   :  { %9 = vsyncpa [#allocation7], 0 }
   0x2   :  { %10 = vsyncpa [#allocation5], 0  ;;  %s15_s14 = sshll.u32 %s1239_s0, 4  ;;  %s1199_s15 = smov [#allocation3]   ;;  %s16_s14 = int_to_ptr.hbm [resolvable:$true] %s15_s14 }
   0x3   :  { %s17_s16 = sshll.u32 %s1199_s15, 4  ;;  %s28_s19 = sshll.u32 %s1240_s1, 4  ;;  %s18_s16 = int_to_ptr.vmem [resolvable:$true] %s17_s16  ;;  %s29_s19 = int_to_ptr.hbm [resolvable:$true] %s28_s19 }
   0x4   :  { %s1200_s20 = smov 1024   ;;  %s1201_s21 = smov 64  }
   0x5   :  { %23 = dma.hbm_to_vmem [thread:$0]  %s16_s14, 2048, %s18_s16, [#allocation4], %s1200_s20, %s1200_s20, %s1201_s21  }
   0x6   :  { %s1202_s22 = smov [#allocation6]   ;;  %s1203_s24 = smov 4  }
   0x7   :  { %s30_s23 = sshll.u32 %s1202_s22, 4  ;;  %s31_s23 = int_to_ptr.vmem [resolvable:$true] %s30_s23 }
   0x8   :  { %36 = dma.hbm_to_vmem [thread:$0]  %s29_s19, 8192, %s31_s23, [#allocation7], %s1201_s21, %s1201_s21, %s1203_s24  }
   0x9   :  { %1193 = dma.done.wait [#allocation4], 2048  }
   0xa   :  { %1194 = vsyncadd [#allocation4], 4294965248 }
   0xb   :  { %1195 = dma.done.wait [#allocation7], 8192  }
   0xc   :  { %1196 = vsyncadd [#allocation7], 4294959104  ;;  %v1047_v0 = vld [vmem:[#allocation6 + $0x38] sm:$0xff]  ;;  %v1046_v4 = vld [vmem:[#allocation6 + $0x30] sm:$0xff]  ;;  %s770_s28 = sshll.u32 %s1242_s3, 4  ;;  %s1205_s29 = smov 128   ;;  %s771_s28 = int_to_ptr.hbm [resolvable:$true] %s770_s28 }
   0xd   :  { %v1055_v1 = vld [vmem:[#allocation6 + $0x78] sm:$0xff]  ;;  %591 = vmatpush.bf16.msra.mxu0 %v1047_v0  ;;  %v1054_v5 = vld [vmem:[#allocation6 + $0x70] sm:$0xff]  ;;  %v1045_v8 = vld [vmem:[#allocation6 + $0x28] sm:$0xff]  ;;  %s1206_s30 = smov 8  }
   0xe   :  { %v1063_v2 = vld [vmem:[#allocation6 + $0xb8] sm:$0xff]  ;;  %605 = vmatpush.bf16.msra.mxu1 %v1055_v1  ;;  %v1062_v6 = vld [vmem:[#allocation6 + $0xb0] sm:$0xff]  ;;  %v1053_v9 = vld [vmem:[#allocation6 + $0x68] sm:$0xff] }
   0xf   :  { %v1071_v3 = vld [vmem:[#allocation6 + $0xf8] sm:$0xff]  ;;  %619 = vmatpush.bf16.msra.mxu2 %v1063_v2  ;;  %v1070_v7 = vld [vmem:[#allocation6 + $0xf0] sm:$0xff]  ;;  %v1061_v10 = vld [vmem:[#allocation6 + $0xa8] sm:$0xff] }
  0x10   :  { %633 = vmatpush.bf16.msra.mxu3 %v1071_v3  ;;  %v1069_v11 = vld [vmem:[#allocation6 + $0xe8] sm:$0xff]  ;;  %v1044_v12 = vld [vmem:[#allocation6 + $0x20] sm:$0xff]  ;;  %v1043_v16 = vld [vmem:[#allocation6 + $0x18] sm:$0xff] }
  0x11   :  { %592 = vmatpush.bf16.msra.mxu0 %v1046_v4  ;;  %v1052_v13 = vld [vmem:[#allocation6 + $0x60] sm:$0xff]  ;;  %v1051_v17 = vld [vmem:[#allocation6 + $0x58] sm:$0xff]  ;;  %v1042_v20 = vld [vmem:[#allocation6 + $0x10] sm:$0xff] }
  0x12   :  { %606 = vmatpush.bf16.msra.mxu1 %v1054_v5  ;;  %v1060_v14 = vld [vmem:[#allocation6 + $0xa0] sm:$0xff]  ;;  %v1059_v18 = vld [vmem:[#allocation6 + $0x98] sm:$0xff]  ;;  %v1050_v21 = vld [vmem:[#allocation6 + $0x50] sm:$0xff] }
  0x13   :  { %620 = vmatpush.bf16.msra.mxu2 %v1062_v6  ;;  %v1068_v15 = vld [vmem:[#allocation6 + $0xe0] sm:$0xff]  ;;  %v1067_v19 = vld [vmem:[#allocation6 + $0xd8] sm:$0xff]  ;;  %v1058_v22 = vld [vmem:[#allocation6 + $0x90] sm:$0xff] }
  0x14   :  { %634 = vmatpush.bf16.msra.mxu3 %v1070_v7  ;;  %v1066_v23 = vld [vmem:[#allocation6 + $0xd0] sm:$0xff]  ;;  %v1041_v24 = vld [vmem:[#allocation6 + $0x8] sm:$0xff]  ;;  %v1040_v28 = vld [vmem:[#allocation6] sm:$0xff] }
  0x15   :  { %593 = vmatpush.bf16.msra.mxu0 %v1045_v8  ;;  %v1049_v25 = vld [vmem:[#allocation6 + $0x48] sm:$0xff]  ;;  %v1048_v29 = vld [vmem:[#allocation6 + $0x40] sm:$0xff]  ;;  %v1079_v32 = vld [vmem:[#allocation6 + $0x138] sm:$0xff] }
  0x16   :  { %607 = vmatpush.bf16.msra.mxu1 %v1053_v9  ;;  %v1057_v26 = vld [vmem:[#allocation6 + $0x88] sm:$0xff]  ;;  %v1056_v30 = vld [vmem:[#allocation6 + $0x80] sm:$0xff]  ;;  %v1087_v33 = vld [vmem:[#allocation6 + $0x178] sm:$0xff] }
  0x17   :  { %621 = vmatpush.bf16.msra.mxu2 %v1061_v10  ;;  %v1065_v27 = vld [vmem:[#allocation6 + $0xc8] sm:$0xff]  ;;  %v1064_v31 = vld [vmem:[#allocation6 + $0xc0] sm:$0xff]  ;;  %v55_v34 = vld [vmem:[#allocation3 + $0x10] sm:$0xff] }
  0x18   :  { %635 = vmatpush.bf16.msra.mxu3 %v1069_v11  ;;  %v63_v35 = vld [vmem:[#allocation3 + $0x50] sm:$0xff]  ;;  %v56_v36 = vld [vmem:[#allocation3 + $0x18] sm:$0xff]  ;;  %v53_v38 = vld [vmem:[#allocation3] sm:$0xff] }
  0x19   :  { %594 = vmatpush.bf16.msra.mxu0 %v1044_v12  ;;  %v64_v37 = vld [vmem:[#allocation3 + $0x58] sm:$0xff]  ;;  %v61_v39 = vld [vmem:[#allocation3 + $0x40] sm:$0xff]  ;;  %v54_v40 = vld [vmem:[#allocation3 + $0x8] sm:$0xff]  ;;  %v71_v44 = vpack.c.bf16 %v63_v35, %v55_v34 }
  0x1a   :  { %608 = vmatpush.bf16.msra.mxu1 %v1052_v13  ;;  %v62_v41 = vld [vmem:[#allocation3 + $0x48] sm:$0xff]  ;;  %v1095_v42 = vld [vmem:[#allocation6 + $0x1b8] sm:$0xff]  ;;  %v72_v45 = vpack.c.bf16 %v64_v37, %v56_v36  ;;  %v69_v46 = vpack.c.bf16 %v61_v39, %v53_v38  ;;  %v1078_v48 = vld [vmem:[#allocation6 + $0x130] sm:$0xff] }
  0x1b   :  { %622 = vmatpush.bf16.msra.mxu2 %v1060_v14  ;;  %v1103_v43 = vld [vmem:[#allocation6 + $0x1f8] sm:$0xff]  ;;  %v70_v47 = vpack.c.bf16 %v62_v41, %v54_v40  ;;  %v1086_v49 = vld [vmem:[#allocation6 + $0x170] sm:$0xff]  ;;  %v1077_v52 = vld [vmem:[#allocation6 + $0x128] sm:$0xff] }
  0x1c   :  { %636 = vmatpush.bf16.msra.mxu3 %v1068_v15  ;;  %v1094_v50 = vld [vmem:[#allocation6 + $0x1b0] sm:$0xff]  ;;  %v1085_v53 = vld [vmem:[#allocation6 + $0x168] sm:$0xff]  ;;  %v1076_v56 = vld [vmem:[#allocation6 + $0x120] sm:$0xff] }
  0x1d   :  { %595 = vmatpush.bf16.msra.mxu0 %v1043_v16  ;;  %v1102_v51 = vld [vmem:[#allocation6 + $0x1f0] sm:$0xff]  ;;  %v1093_v54 = vld [vmem:[#allocation6 + $0x1a8] sm:$0xff]  ;;  %v1084_v57 = vld [vmem:[#allocation6 + $0x160] sm:$0xff] }
  0x1e   :  { %609 = vmatpush.bf16.msra.mxu1 %v1051_v17  ;;  %v1101_v55 = vld [vmem:[#allocation6 + $0x1e8] sm:$0xff]  ;;  %v1092_v58 = vld [vmem:[#allocation6 + $0x1a0] sm:$0xff]  ;;  %v1075_v60 = vld [vmem:[#allocation6 + $0x118] sm:$0xff] }
  0x1f   :  { %623 = vmatpush.bf16.msra.mxu2 %v1059_v18  ;;  %v1100_v59 = vld [vmem:[#allocation6 + $0x1e0] sm:$0xff]  ;;  %v1083_v61 = vld [vmem:[#allocation6 + $0x158] sm:$0xff]  ;;  %v1074_v0 = vld [vmem:[#allocation6 + $0x110] sm:$0xff] }
  0x20   :  { %637 = vmatpush.bf16.msra.mxu3 %v1067_v19  ;;  %v1091_v62 = vld [vmem:[#allocation6 + $0x198] sm:$0xff]  ;;  %v1082_v1 = vld [vmem:[#allocation6 + $0x150] sm:$0xff]  ;;  %v1073_v4 = vld [vmem:[#allocation6 + $0x108] sm:$0xff] }
  0x21   :  { %596 = vmatpush.bf16.msra.mxu0 %v1042_v20  ;;  %v1099_v63 = vld [vmem:[#allocation6 + $0x1d8] sm:$0xff]  ;;  %v1090_v2 = vld [vmem:[#allocation6 + $0x190] sm:$0xff]  ;;  %v1081_v5 = vld [vmem:[#allocation6 + $0x148] sm:$0xff] }
  0x22   :  { %610 = vmatpush.bf16.msra.mxu1 %v1050_v21  ;;  %v1098_v3 = vld [vmem:[#allocation6 + $0x1d0] sm:$0xff]  ;;  %v1089_v6 = vld [vmem:[#allocation6 + $0x188] sm:$0xff]  ;;  %v1072_v8 = vld [vmem:[#allocation6 + $0x100] sm:$0xff] }
  0x23   :  { %624 = vmatpush.bf16.msra.mxu2 %v1058_v22  ;;  %v1097_v7 = vld [vmem:[#allocation6 + $0x1c8] sm:$0xff]  ;;  %v1080_v9 = vld [vmem:[#allocation6 + $0x140] sm:$0xff]  ;;  %v59_v16 = vld [vmem:[#allocation3 + $0x30] sm:$0xff] }
  0x24   :  { %638 = vmatpush.bf16.msra.mxu3 %v1066_v23  ;;  %v1088_v10 = vld [vmem:[#allocation6 + $0x180] sm:$0xff]  ;;  %v58_v14 = vld [vmem:[#allocation3 + $0x28] sm:$0xff]  ;;  %v67_v17 = vld [vmem:[#allocation3 + $0x70] sm:$0xff] }
  0x25   :  { %597 = vmatpush.bf16.msra.mxu0 %v1041_v24  ;;  %v1096_v11 = vld [vmem:[#allocation6 + $0x1c0] sm:$0xff]  ;;  %v66_v15 = vld [vmem:[#allocation3 + $0x68] sm:$0xff]  ;;  %v60_v18 = vld [vmem:[#allocation3 + $0x38] sm:$0xff]  ;;  %v75_v22 = vpack.c.bf16 %v67_v17, %v59_v16 }
  0x26   :  { %611 = vmatpush.bf16.msra.mxu1 %v1049_v25  ;;  %v57_v12 = vld [vmem:[#allocation3 + $0x20] sm:$0xff]  ;;  %v68_v19 = vld [vmem:[#allocation3 + $0x78] sm:$0xff]  ;;  %v74_v21 = vpack.c.bf16 %v66_v15, %v58_v14 }
  0x27   :  { %625 = vmatpush.bf16.msra.mxu2 %v1057_v26  ;;  %v65_v13 = vld [vmem:[#allocation3 + $0x60] sm:$0xff]  ;;  %v76_v23 = vpack.c.bf16 %v68_v19, %v60_v18 }
  0x28   :  { %639 = vmatpush.bf16.msra.mxu3 %v1065_v27  ;;  %v73_v20 = vpack.c.bf16 %v65_v13, %v57_v12 }
  0x29   :  { %598 = vmatpush.bf16.msra.mxu0 %v1040_v28 }
  0x2a   :  { %612 = vmatpush.bf16.msra.mxu1 %v1048_v29 }
  0x2b   :  { %626 = vmatpush.bf16.msra.mxu2 %v1056_v30 }
  0x2c   :  { %640 = vmatpush.bf16.msra.mxu3 %v1064_v31  ;;  %599 = vmatmul.bf16.vlgmr.msra.gmra.mxu0 %v69_v46  ;;  %v1112_v46 = vld [vmem:[%s1241_s2] ss:$0 sm:$0xff]  ;;  %s1204_s2 = smov [#allocation8]  }
  0x2d   :  { %647 = vmatpush.bf16.msrb.mxu0 %v1079_v32  ;;  %613 = vmatmul.bf16.vlgmr.msra.gmra.mxu1 %v70_v47  ;;  %s768_s25 = sshll.u32 %s1204_s2, 4  ;;  %s769_s25 = int_to_ptr.vmem [resolvable:$true] %s768_s25 }
  0x2e   :  { %661 = vmatpush.bf16.msrb.mxu1 %v1087_v33  ;;  %627 = vmatmul.bf16.vlgmr.msra.gmra.mxu2 %v71_v44 }
  0x2f   :  { %675 = vmatpush.bf16.msrb.mxu2 %v1095_v42  ;;  %641 = vmatmul.bf16.vlgmr.msra.gmra.mxu3 %v72_v45 }
  0x30   :  { %689 = vmatpush.bf16.msrb.mxu3 %v1103_v43 }
  0x31   :  { %648 = vmatpush.bf16.msrb.mxu0 %v1078_v48 }
  0x32   :  { %662 = vmatpush.bf16.msrb.mxu1 %v1086_v49 }
  0x33   :  { %676 = vmatpush.bf16.msrb.mxu2 %v1094_v50 }
  0x34   :  { %690 = vmatpush.bf16.msrb.mxu3 %v1102_v51 }
  0x35   :  { %649 = vmatpush.bf16.msrb.mxu0 %v1077_v52 }
  0x36   :  { %663 = vmatpush.bf16.msrb.mxu1 %v1085_v53 }
  0x37   :  { %677 = vmatpush.bf16.msrb.mxu2 %v1093_v54 }
  0x38   :  { %691 = vmatpush.bf16.msrb.mxu3 %v1101_v55 }
  0x39   :  { %650 = vmatpush.bf16.msrb.mxu0 %v1076_v56 }
  0x3a   :  { %664 = vmatpush.bf16.msrb.mxu1 %v1084_v57 }
  0x3b   :  { %678 = vmatpush.bf16.msrb.mxu2 %v1092_v58 }
  0x3c   :  { %692 = vmatpush.bf16.msrb.mxu3 %v1100_v59 }
  0x3d   :  { %651 = vmatpush.bf16.msrb.mxu0 %v1075_v60 }
  0x3e   :  { %665 = vmatpush.bf16.msrb.mxu1 %v1083_v61 }
  0x3f   :  { %679 = vmatpush.bf16.msrb.mxu2 %v1091_v62 }
  0x40   :  { %693 = vmatpush.bf16.msrb.mxu3 %v1099_v63 }
  0x41   :  { %652 = vmatpush.bf16.msrb.mxu0 %v1074_v0 }
  0x42   :  { %666 = vmatpush.bf16.msrb.mxu1 %v1082_v1 }
  0x43   :  { %680 = vmatpush.bf16.msrb.mxu2 %v1090_v2 }
  0x44   :  { %694 = vmatpush.bf16.msrb.mxu3 %v1098_v3 }
  0x45   :  { %653 = vmatpush.bf16.msrb.mxu0 %v1073_v4 }
  0x46   :  { %667 = vmatpush.bf16.msrb.mxu1 %v1081_v5 }
  0x47   :  { %681 = vmatpush.bf16.msrb.mxu2 %v1089_v6 }
  0x48   :  { %695 = vmatpush.bf16.msrb.mxu3 %v1097_v7 }
  0x49   :  { %654 = vmatpush.bf16.msrb.mxu0 %v1072_v8 }
  0x4a   :  { %668 = vmatpush.bf16.msrb.mxu1 %v1080_v9 }
  0x4b   :  { %682 = vmatpush.bf16.msrb.mxu2 %v1088_v10 }
  0x4c   :  { %696 = vmatpush.bf16.msrb.mxu3 %v1096_v11  ;;  %655 = vmatmul.bf16.vlgmr.msrb.gmra.mxu0 %v73_v20 }
  0x4d   :  { %669 = vmatmul.bf16.vlgmr.msrb.gmra.mxu1 %v74_v21 }
  0x4e   :  { %683 = vmatmul.bf16.vlgmr.msrb.gmra.mxu2 %v75_v22 }
  0x4f   :  { %697 = vmatmul.bf16.vlgmr.msrb.gmra.mxu3 %v76_v23 }
  0xa9   :  { %v600_v24 = vpop.f32.mrf.mxu0 }
  0xaa   :  { %v614_v25 = vpop.f32.mrf.mxu1 }
  0xab   :  { %v615_v28 = vadd.f32 %v614_v25, %v600_v24 }
  0xb1   :  { %v628_v26 = vpop.f32.mrf.mxu2  ;;  %v602_v29 = vpop.f32.mrf.mxu0 }
  0xb2   :  { %v642_v27 = vpop.f32.mrf.mxu3  ;;  %v616_v30 = vpop.f32.mrf.mxu1  ;;  %v629_v31 = vadd.f32 %v628_v26, %v615_v28 }
  0xb3   :  { %v617_v35 = vadd.f32 %v616_v30, %v602_v29 }
  0xb4   :  { %v643_v34 = vadd.f32 %v642_v27, %v629_v31 }
  0xb9   :  { %v630_v32 = vpop.f32.mrf.mxu2 }
  0xba   :  { %v644_v33 = vpop.f32.mrf.mxu3  ;;  %v631_v39 = vadd.f32 %v630_v32, %v617_v35 }
  0xbc   :  { %v645_v43 = vadd.f32 %v644_v33, %v631_v39 }
  0xc9   :  { %v656_v36 = vpop.f32.mrf.mxu0 }
  0xca   :  { %v657_v37 = vadd.f32 %v656_v36, %v643_v34  ;;  %v670_v38 = vpop.f32.mrf.mxu1 }
  0xcc   :  { %v671_v40 = vadd.f32 %v670_v38, %v657_v37 }
  0xd1   :  { %v684_v41 = vpop.f32.mrf.mxu2  ;;  %v658_v45 = vpop.f32.mrf.mxu0 }
  0xd2   :  { %v698_v42 = vpop.f32.mrf.mxu3  ;;  %v685_v44 = vadd.f32 %v684_v41, %v671_v40  ;;  %v659_v48 = vadd.f32 %v658_v45, %v645_v43  ;;  %v672_v50 = vpop.f32.mrf.mxu1 }
  0xd4   :  { %v699_v47 = vadd.f32 %v698_v42, %v685_v44  ;;  %v673_v51 = vadd.f32 %v672_v50, %v659_v48 }
  0xd6   :  { %v716_v49 = vadd.f32 %v1112_v46, %v699_v47 }
  0xd8   :  { %718 = vmax.xlane.f32.xlu0 %v716_v49 }
  0xd9   :  { %v686_v52 = vpop.f32.mrf.mxu2 }
  0xda   :  { %v687_v53 = vadd.f32 %v686_v52, %v673_v51  ;;  %v700_v54 = vpop.f32.mrf.mxu3 }
  0xdc   :  { %v701_v55 = vadd.f32 %v700_v54, %v687_v53 }
  0xde   :  { %v717_v56 = vadd.f32 %v1112_v46, %v701_v55 }
  0xe0   :  { %720 = vmax.xlane.f32.xlu0 %v717_v56 }
 0x14b   :  { %v719_v57 = vpop.xlane.xlu0 %718 }
 0x14c   :  { %v722_v58 = vsub.f32 %v716_v49, %v719_v57 }
 0x14e   :  { %v724_v59 = vmul.f32 1.442695, %v722_v58 }
 0x150   :  { %1113 = vpow2.f32 %v724_v59 }
 0x153   :  { %v721_v60 = vpop.xlane.xlu0 %720 }
 0x154   :  { %v723_v61 = vsub.f32 %v717_v56, %v721_v60 }
 0x156   :  { %v1114_v62 = vpop.eup %1113  ;;  %v726_v63 = vmul.f32 1.442695, %v723_v61 }
 0x157   :  { %728 = vadd.xlane.f32.xlu1 %v1114_v62 }
 0x158   :  { %1115 = vpow2.f32 %v726_v63 }
 0x15e   :  { %v1116_v0 = vpop.eup %1115 }
 0x15f   :  { %730 = vadd.xlane.f32.xlu1 %v1116_v0 }
 0x1ca   :  { %v729_v1 = vpop.xlane.xlu1 %728 }
 0x1cb   :  { %1117 = vrcp.f32 %v729_v1  ;;  %v743_v6 = vand.u32 2147483648, %v729_v1  ;;  %v741_v8 = vand.u32 2147483647, %v729_v1  ;;  %vm737_vm1 = vweird.f32 %v729_v1 }
 0x1cd   :  { %v744_v11 = vor.u32 1.1754944e-38, %v743_v6  ;;  %vm742_vm3 = vcmp.eq.f32.partialorder %v741_v8, 8.507059e+37 }
 0x1d1   :  { %v1118_v2 = vpop.eup %1117 }
 0x1d2   :  { %v733_v3 = vmul.f32 %v1118_v2, %v729_v1  ;;  %v731_v4 = vpop.xlane.xlu1 %730  ;;  %vm738_vm0 = vweird.f32 %v1118_v2 }
 0x1d3   :  { %1119 = vrcp.f32 %v731_v4  ;;  %vm739_vm2 = vmor %vm737_vm1, %vm738_vm0  ;;  %v758_v17 = vand.u32 2147483648, %v731_v4  ;;  %v756_v19 = vand.u32 2147483647, %v731_v4  ;;  %vm752_vm5 = vweird.f32 %v731_v4 }
 0x1d4   :  { %v734_v5 = vsub.f32 1.0, %v733_v3 }
 0x1d5   :  { %v759_v21 = vor.u32 1.1754944e-38, %v758_v17  ;;  %vm757_vm7 = vcmp.eq.f32.partialorder %v756_v19, 8.507059e+37 }
 0x1d6   :  { %v735_v7 = vmul.f32 %v1118_v2, %v734_v5 }
 0x1d8   :  { %v736_v9 = vadd.f32 %v1118_v2, %v735_v7 }
 0x1d9   :  { %v1120_v10 = vpop.eup %1119 }
 0x1da   :  { %v740_v12 = vsel %vm739_vm2, %v1118_v2, %v736_v9  ;;  %v748_v13 = vmul.f32 %v1120_v10, %v731_v4  ;;  %vm753_vm4 = vweird.f32 %v1120_v10 }
 0x1db   :  { %v745_v14 = vsel %vm742_vm3, %v744_v11, %v740_v12  ;;  %vm754_vm6 = vmor %vm752_vm5, %vm753_vm4 }
 0x1dc   :  { %v746_v15 = vmul.f32 %v1114_v62, %v745_v14  ;;  %v749_v16 = vsub.f32 1.0, %v748_v13 }
 0x1de   :  { %762 = vst [vmem:[#allocation8] sm:$0xff] %v746_v15  ;;  %v750_v18 = vmul.f32 %v1120_v10, %v749_v16 }
 0x1e0   :  { %v751_v20 = vadd.f32 %v1120_v10, %v750_v18 }
 0x1e2   :  { %v755_v22 = vsel %vm754_vm6, %v1120_v10, %v751_v20 }
 0x1e3   :  { %v760_v23 = vsel %vm757_vm7, %v759_v21, %v755_v22 }
 0x1e4   :  { %v761_v24 = vmul.f32 %v1116_v0, %v760_v23 }
 0x1e6   :  { %763 = vst [vmem:[#allocation8 + $0x8] sm:$0xff] %v761_v24 }
 0x1e7   :  { %776 = dma.vmem_to_hbm [thread:$0]  %s769_s25, 256, %s771_s28, [#allocation5], %s1205_s29, %s1205_s29, %s1206_s30  }
 0x1e8   :  { %1197 = dma.done.wait [#allocation5], 256  }
 0x1e9   :  { %1198 = vsyncadd [#allocation5], 4294967040 }
 0x1ea   :  { %781 = vsyncpa [#allocation4], 1 }
 0x1eb   :  { %782 = vsyncpa [#allocation7], 1 }
 0x1ec   :  { %783 = vsyncpa [#allocation5], 1 }

</bundles_post_ra>
